<compile_context>
chip_gen: v5e
topology: v5e:2x2
jax: 0.10.0
libtpu: 0.0.40
codegen_flags: <defaults>
</compile_context>

<pallas_src>
import functools

import numpy as np
import jax
import jax.numpy as jnp
from jax.experimental import pallas as pl
from jax.experimental.pallas import tpu as pltpu


def _round_up(x, m):
    return ((x + m - 1) // m) * m


def _sublane_multiple(dtype):
    """Packed-sublane tile height: f32 -> 8, bf16 -> 16, int8/fp8 -> 32."""
    itemsize = jnp.dtype(dtype).itemsize
    return max(8, 32 // itemsize)


def _gap_kernel(x_ref, o_ref, acc_ref, *, inv_n, hw, tile_n, mask_last, chunked):
    """Accumulate one (tile_r, tile_n) pixel tile; finalize mean on last step.

    x_ref:   (tile_r, tile_n) input tile; rows = flattened (batch, channel).
    o_ref:   (tile_r, 1)      output block (resident across the pixel axis).
    acc_ref: (tile_r, 128)    f32 partial sums if `chunked`, else (tile_r, 1).
    """
    j = pl.program_id(1)

    @pl.when(j == 0)
    def _():
        acc_ref[...] = jnp.zeros_like(acc_ref)

    x = x_ref[...].astype(jnp.float32)

    if mask_last:
        # Last pixel tile may extend past H*W; OOB lane contents are
        # unspecified, so zero them (rem >= tile_n on non-last tiles, so the
        # select is a no-op there and stays a cheap VPU op under the DMA).
        lane = jax.lax.broadcasted_iota(jnp.int32, x.shape, 1)
        rem = hw - j * tile_n
        x = jnp.where(lane < rem, x, 0.0)

    if chunked:
        # Pure elementwise adds over lane-tile-aligned 128-wide chunks; the
        # cross-lane reduce is deferred to the final step.
        part = x[:, 0:128]
        for c in range(1, tile_n // 128):
            part = part + x[:, c * 128:(c + 1) * 128]
        acc_ref[...] += part
    else:
        acc_ref[...] += jnp.sum(x, axis=1, keepdims=True)

    @pl.when(j == pl.num_programs(1) - 1)
    def _():
        if chunked:
            s = jnp.sum(acc_ref[...], axis=1, keepdims=True)
        else:
            s = acc_ref[...]
        o_ref[...] = (s * inv_n).astype(o_ref.dtype)


def global_avg_pool(x, *, block_bytes=4 * 1024 * 1024, max_tile_cols=4096):
    """AdaptiveAvgPool2d(1): (B, C, H, W) -> (B, C, 1, 1).  No padding pre-pass."""
    B, C, H, W = x.shape
    BC, HW = B * C, H * W

    # NCHW is already (B*C, H*W)-contiguous: no transpose, pixels on lanes.
    x2 = x.reshape(BC, HW)
    itemsize = jnp.dtype(x.dtype).itemsize
    sub = _sublane_multiple(x.dtype)

    # ---- pixel (reduction / lane) tiling -------------------------------
    max_tile_cols = max(128, (max_tile_cols // 128) * 128)
    if HW <= max_tile_cols:
        tile_n = HW                     # block dim == full array dim: exempt
        mask_last = False
    else:
        tile_n = max_tile_cols          # multiple of 128
        mask_last = (HW % tile_n) != 0

    # VMEM footprint pads the lane dim to 128 even for narrow pixel tiles.
    vmem_cols = _round_up(tile_n, 128)

    # ---- row (parallel / sublane) tiling, budgeted to ~block_bytes ------
    tile_r = max(sub, (block_bytes // (vmem_cols * itemsize)) // sub * sub)
    tile_r = min(tile_r, _round_up(BC, sub))

    bc_tiles = pl.cdiv(BC, tile_r)
    hw_tiles = pl.cdiv(HW, tile_n)

    # v7x megacore: make sure both TensorCores get a row tile when there is
    # real pixel work to hide it behind (no effect on v5e/v6e, 1 TC).
    if bc_tiles == 1 and hw_tiles > 1 and BC >= 2 * sub:
        tile_r = _round_up(pl.cdiv(BC, 2), sub)
        bc_tiles = pl.cdiv(BC, tile_r)

    # Elementwise-chunk accumulation only when the chunk count stays modest.
    chunked = (tile_n % 128 == 0) and (tile_n // 128 <= 32)
    acc_cols = 128 if chunked else 1

    grid = (bc_tiles, hw_tiles)

    kernel = functools.partial(
        _gap_kernel,
        inv_n=1.0 / float(HW),
        hw=HW,
        tile_n=tile_n,
        mask_last=mask_last,
        chunked=chunked,
    )

    out = pl.pallas_call(
        kernel,
        out_shape=jax.ShapeDtypeStruct((BC, 1), x.dtype),
        grid=grid,
        in_specs=[pl.BlockSpec((tile_r, tile_n), lambda i, j: (i, j))],
        out_specs=pl.BlockSpec((tile_r, 1), lambda i, j: (i, 0)),
        scratch_shapes=[pltpu.VMEM((tile_r, acc_cols), jnp.float32)],
        compiler_params=pltpu.CompilerParams(
            dimension_semantics=("parallel", "arbitrary")),
        cost_estimate=pl.CostEstimate(
            flops=BC * HW,
            transcendentals=0,
            bytes_accessed=BC * HW * itemsize + BC * itemsize),
    )(x2)

    return out.reshape(B, C, 1, 1)


def reference_forward(x):
    return jnp.mean(x, axis=(2, 3), keepdims=True)


def _check(x, **kw):
    out = jax.block_until_ready(global_avg_pool(x, **kw))
    ref = jax.block_until_ready(reference_forward(x))
    assert out.shape == (x.shape[0], x.shape[1], 1, 1)
    if not np.allclose(np.asarray(out), np.asarray(ref), rtol=1e-5, atol=1e-5):
        raise AssertionError("Pallas output mismatch vs pure-JAX reference")


if __name__ == "__main__":
    key = jax.random.PRNGKey(0)
    k0, k1, k2 = jax.random.split(key, 3)

    # Primary small case implied by the module: (B, C, H, W) = (2, 4, 16, 16).
    _check(jax.random.normal(k0, (2, 4, 16, 16), jnp.float32))

    # Unaligned spatial size (H*W = 49): single full-dim pixel block, no pad.
    _check(jax.random.normal(k1, (2, 4, 7, 7), jnp.float32))

    # Force the multi-pixel-tile + masked-last-tile path with a tiny budget.
    _check(jax.random.normal(k2, (2, 4, 18, 18), jnp.float32),
           block_bytes=4096, max_tile_cols=128)

    print("KERNEL_OK")
</pallas_src>

<mosaic_0001>
module attributes {stable_mosaic.version = 11 : i64} {
  func.func @_gap_kernel(%arg0: i32, %arg1: i32, %arg2: memref<8x256xf32, #tpu.memory_space<vmem>>, %arg3: memref<8x1xf32, #tpu.memory_space<vmem>>, %arg4: memref<8x128xf32, #tpu.memory_space<vmem>>) attributes {dimension_semantics = [#tpu.dimension_semantics<parallel>, #tpu.dimension_semantics<arbitrary>], iteration_bounds = array<i64: 1, 1>, scalar_prefetch = 0 : i64, scratch_operands = 1 : i64, tpu.core_type = #tpu.core_type<tc>, window_params = [{transform_indices = @transform_0, window_bounds = array<i64: 8, 256>}, {transform_indices = @transform_1, window_bounds = array<i64: 8, 1>}]} {
    %c0_i32 = arith.constant 0 : i32
    %0 = arith.cmpi eq, %arg1, %c0_i32 : i32
    %1 = arith.extui %0 : i1 to i32
    %c0_i32_0 = arith.constant 0 : i32
    %2 = arith.cmpi ne, %1, %c0_i32_0 : i32
    scf.if %2 {
      %cst = arith.constant 0.000000e+00 : f32
      %13 = vector.broadcast %cst : f32 to vector<8x128xf32>
      %c0_8 = arith.constant 0 : index
      %c0_9 = arith.constant 0 : index
      %14 = vector.load %arg4[%c0_8, %c0_9] : memref<8x128xf32, #tpu.memory_space<vmem>>, vector<8x128xf32>
      tpu.vector_store %arg4[%c0_8, %c0_9], %13 {strides = array<i32>} : memref<8x128xf32, #tpu.memory_space<vmem>>, vector<8x128xf32>,
    } else {
    }
    %c0 = arith.constant 0 : index
    %c0_1 = arith.constant 0 : index
    %3 = vector.load %arg2[%c0, %c0_1] : memref<8x256xf32, #tpu.memory_space<vmem>>, vector<8x256xf32>
    %4 = vector.extract_strided_slice %3 {offsets = [0, 0], sizes = [8, 128], strides = [1, 1]} : vector<8x256xf32> to vector<8x128xf32>
    %5 = vector.extract_strided_slice %3 {offsets = [0, 128], sizes = [8, 128], strides = [1, 1]} : vector<8x256xf32> to vector<8x128xf32>
    %6 = arith.addf %4, %5 : vector<8x128xf32>
    %c0_2 = arith.constant 0 : index
    %c0_3 = arith.constant 0 : index
    %7 = vector.load %arg4[%c0_2, %c0_3] : memref<8x128xf32, #tpu.memory_space<vmem>>, vector<8x128xf32>
    %8 = arith.addf %7, %6 : vector<8x128xf32>
    %c0_4 = arith.constant 0 : index
    %c0_5 = arith.constant 0 : index
    %9 = vector.load %arg4[%c0_4, %c0_5] : memref<8x128xf32, #tpu.memory_space<vmem>>, vector<8x128xf32>
    tpu.vector_store %arg4[%c0_4, %c0_5], %8 {strides = array<i32>} : memref<8x128xf32, #tpu.memory_space<vmem>>, vector<8x128xf32>,
    %c0_i32_6 = arith.constant 0 : i32
    %10 = arith.cmpi eq, %arg1, %c0_i32_6 : i32
    %11 = arith.extui %10 : i1 to i32
    %c0_i32_7 = arith.constant 0 : i32
    %12 = arith.cmpi ne, %11, %c0_i32_7 : i32
    scf.if %12 {
      %c0_8 = arith.constant 0 : index
      %c0_9 = arith.constant 0 : index
      %13 = vector.load %arg4[%c0_8, %c0_9] : memref<8x128xf32, #tpu.memory_space<vmem>>, vector<8x128xf32>
      %cst = arith.constant dense<0.000000e+00> : vector<8xf32>
      %14 = vector.multi_reduction <add>, %13, %cst [1] : vector<8x128xf32> to vector<8xf32>
      %15 = vector.shape_cast %14 : vector<8xf32> to vector<8x1xf32>
      %cst_10 = arith.constant 3.906250e-03 : f32
      %16 = vector.broadcast %cst_10 : f32 to vector<8x1xf32>
      %17 = arith.mulf %15, %16 : vector<8x1xf32>
      %c0_11 = arith.constant 0 : index
      %c0_12 = arith.constant 0 : index
      %18 = vector.load %arg3[%c0_11, %c0_12] : memref<8x1xf32, #tpu.memory_space<vmem>>, vector<8x1xf32>
      tpu.vector_store %arg3[%c0_11, %c0_12], %17 {strides = array<i32>} : memref<8x1xf32, #tpu.memory_space<vmem>>, vector<8x1xf32>,
    } else {
    }
    return
  }
  func.func @transform_0(%arg0: i32, %arg1: i32) -> (i32, i32) {
    %c0_i32 = arith.constant 0 : i32
    return %arg0, %arg1 : i32, i32
  }
  func.func @transform_1(%arg0: i32, %arg1: i32) -> (i32, i32) {
    %c0_i32 = arith.constant 0 : i32
    %c0_i32_0 = arith.constant 0 : i32
    return %arg0, %c0_i32 : i32, i32
  }
}

</mosaic_0001>

<bundles_post_ra>
// kernel: tpu_custom_call.1
= control target key start
LH: loop header
LB: loop body
LE: loop exit
PB: predicated region body
PF: predicated region fallthrough
CT: control target
= control target key end

     0   :  { %6 = vsyncpa [#allocation4], 0  ;;  %s74_s9 = smov [#allocation3]   ;;  %s91_s0 = inlined_call_operand.hbm [shape: f32[8,256], index: 0, kind: input, shape index: {}]   ;;  %s92_s1 = inlined_call_operand.vmem [shape: f32[8,1], index: 1, kind: output, shape index: {}]  }
   0x1   :  { %s12_s8 = sshll.u32 %s91_s0, 4  ;;  %s14_s10 = sshll.u32 %s74_s9, 4  ;;  %s13_s8 = int_to_ptr.hbm [resolvable:$true] %s12_s8  ;;  %s15_s10 = int_to_ptr.vmem [resolvable:$true] %s14_s10 }
   0x2   :  { %17 = dma.hbm_to_vmem [thread:$0]  %s13_s8, 256, %s15_s10, [#allocation4]  }
   0x3   :  { %72 = dma.done.wait [#allocation4], 256  }
   0x4   :  { %73 = vsyncadd [#allocation4], 4294967040  ;;  %v27_v0 = vld [vmem:[#allocation3] sm:$0xff]  ;;  %v28_v1 = vld [vmem:[#allocation3 + $0x8] sm:$0xff]  ;;  %vm40_vm0 = vcmask 7168  }
   0x5   :  { %v29_v2 = vadd.f32 %v28_v1, %v27_v0 }
   0x7   :  { %37 = vadd.xlane.f32.xlu0 %v29_v2 }
  0x7a   :  { %v38_v3 = vpop.xlane.xlu0 %37 }
  0x7b   :  { %v39_v4 = vmul.f32 0.00390625, %v38_v3 }
  0x7d   :  { %41 = vst.msk [vmem:[%s92_s1] sm:$0xff] %vm40_vm0, %v39_v4 }
  0x7e   :  { %46 = vsyncpa [#allocation4], 1 }

</bundles_post_ra>
